<compile_context>
chip_gen: v6e
topology: v6e:2x2x1
jax: 0.10.0
libtpu: 0.0.40
codegen_flags: <defaults>
</compile_context>

<pallas_src>
import functools
import math

import jax
import jax.numpy as jnp
import numpy as np
from jax.experimental import pallas as pl
from jax.experimental.pallas import tpu as pltpu

LN_EPS = 1e-5


def _gelu_tanh(x):
    # TODO(synk): PyTorch nn.GELU() default is erf-exact; tanh approximation used
    # here (and in the in-script reference) -- deviation is ~3e-4 absolute.
    c = math.sqrt(2.0 / math.pi)
    return 0.5 * x * (1.0 + jnp.tanh(c * (x + 0.044715 * (x * x * x))))


def _vmem_limit_bytes():
    """Explicit scoped-VMEM budget: physical capacity minus headroom, capped at
    100 MiB (=> ~100 MiB on v5e/v6e's 128 MiB, ~56 MiB on v7x's 64 MiB)."""
    try:
        cap = int(pltpu.get_tpu_info().vmem_capacity_bytes)
    except Exception:
        cap = 64 * 1024 * 1024
    return max(32 * 1024 * 1024, min(cap - (8 << 20), 100 * 1024 * 1024))


# ---------------------------------------------------------------------------
# Kernels
# ---------------------------------------------------------------------------

def _linear_kernel(x_ref, w_ref, b_ref, o_ref):
    """o = x @ W_t + b  (bf16 MXU inputs, f32 accumulation)."""
    y = jnp.dot(x_ref[...].astype(jnp.bfloat16), w_ref[...],
                preferred_element_type=jnp.float32) + b_ref[...]
    o_ref[...] = y.astype(o_ref.dtype)


def _ln_head_kernel(x_ref, g_ref, b_ref, w_ref, bias_ref, o_ref, *, eps):
    """Final LayerNorm on the CLS token + classifier head."""
    x = x_ref[...].astype(jnp.float32)
    mu = jnp.mean(x, axis=-1, keepdims=True)
    xc = x - mu
    var = jnp.mean(xc * xc, axis=-1, keepdims=True)
    ln = xc * jax.lax.rsqrt(var + eps) * g_ref[...] + b_ref[...]
    y = jnp.dot(ln.astype(jnp.bfloat16), w_ref[...],
                preferred_element_type=jnp.float32) + bias_ref[...]
    o_ref[...] = y.astype(o_ref.dtype)


def _encoder_kernel(x_ref, ln1g_ref, ln1b_ref, wqkv_ref, wp_ref, bp_ref,
                    ln2g_ref, ln2b_ref, w1_ref, b1_ref, w2_ref, b2_ref,
                    o_ref, attn_ref,
                    *, num_heads, head_dim, head_group, seq_len, eps,
                    mlp_chunk):
    """One fused transformer encoder layer for a block of Bt batch samples."""
    Bt, Np, C = x_ref.shape
    M = w1_ref.shape[1]
    rows = Bt * Np
    x = x_ref[...].astype(jnp.float32).reshape(rows, C)

    # ---- LayerNorm 1 (f32) ----
    mu = jnp.mean(x, axis=-1, keepdims=True)
    xc = x - mu
    var = jnp.mean(xc * xc, axis=-1, keepdims=True)
    ln1 = xc * jax.lax.rsqrt(var + eps) * ln1g_ref[...] + ln1b_ref[...]

    # ---- fused QKV projection (attention scale pre-folded into Q weights) ----
    qkv = jnp.dot(ln1.astype(jnp.bfloat16), wqkv_ref[...],
                  preferred_element_type=jnp.float32)          # (rows, 3C) f32
    qkv_bf = qkv.astype(jnp.bfloat16)        # cast ONCE; per-head slices below

    # key-padding mask as a single (1, Np) row (broadcasts over query rows)
    key_bias = None
    if Np > seq_len:
        col = jax.lax.broadcasted_iota(jnp.int32, (1, Np), 1)
        key_bias = jnp.where(col < seq_len, 0.0, -1e30).astype(jnp.float32)

    # ---- attention: heads processed in lane-dense groups so each store into
    # the bf16 attention scratch is an unmasked, group-wide slab (group width is
    # a multiple of 128 lanes at production head_dim=64).  Bt is kept <= 2 by
    # the wrapper so this static unroll stays short (bounded vreg pressure). ----
    for b in range(Bt):
        r0 = b * Np
        for g in range(0, num_heads, head_group):
            outs = []
            for h in range(g, g + head_group):
                lo = h * head_dim
                qh = qkv_bf[r0:r0 + Np, 0 * C + lo:0 * C + lo + head_dim]
                kh = qkv_bf[r0:r0 + Np, 1 * C + lo:1 * C + lo + head_dim]
                vh = qkv_bf[r0:r0 + Np, 2 * C + lo:2 * C + lo + head_dim]
                # contract over the shared D axis -- no explicit kh.T
                s = jax.lax.dot_general(
                    qh, kh, (((1,), (1,)), ((), ())),
                    preferred_element_type=jnp.float32)        # (Np, Np)
                if key_bias is not None:
                    s = s + key_bias
                s = s - jnp.max(s, axis=-1, keepdims=True)
                e = jnp.exp(s)
                p = e * pl.reciprocal(jnp.sum(e, axis=-1, keepdims=True),
                                      approx=True)
                outs.append(jnp.dot(p.astype(jnp.bfloat16), vh,
                                    preferred_element_type=jnp.float32))
            blk = outs[0] if len(outs) == 1 else jnp.concatenate(outs, axis=-1)
            c0 = g * head_dim
            attn_ref[r0:r0 + Np, c0:c0 + head_group * head_dim] = \
                blk.astype(attn_ref.dtype)

    # ---- output projection + residual (attn scratch is bf16, consumed as-is) --
    proj = jnp.dot(attn_ref[...], wp_ref[...],
                   preferred_element_type=jnp.float32) + bp_ref[...]
    x = x + proj

    # ---- LayerNorm 2 ----
    mu2 = jnp.mean(x, axis=-1, keepdims=True)
    xc2 = x - mu2
    var2 = jnp.mean(xc2 * xc2, axis=-1, keepdims=True)
    ln2 = (xc2 * jax.lax.rsqrt(var2 + eps) * ln2g_ref[...] + ln2b_ref[...]
           ).astype(jnp.bfloat16)

    # ---- MLP, hidden dim chunked so h1 never fully materializes (v7x VMEM) ----
    mlp = None
    for off in range(0, M, mlp_chunk):
        sz = min(mlp_chunk, M - off)
        h1 = jnp.dot(ln2, w1_ref[:, off:off + sz],
                     preferred_element_type=jnp.float32) + b1_ref[:, off:off + sz]
        h1 = _gelu_tanh(h1)
        part = jnp.dot(h1.astype(jnp.bfloat16), w2_ref[off:off + sz, :],
                       preferred_element_type=jnp.float32)
        mlp = part if mlp is None else mlp + part
    x = x + mlp + b2_ref[...]

    o_ref[...] = x.reshape(Bt, Np, C).astype(o_ref.dtype)


# ---------------------------------------------------------------------------
# pallas_call wrappers
# ---------------------------------------------------------------------------

def _linear(x2d, w_t_bf16, b_row, *, vmem_limit):
    """Row-tiled dense layer (patch embedding)."""
    rows, kdim = x2d.shape
    out_dim = w_t_bf16.shape[1]
    rt = rows
    for cand in (512, 256, 128, 64, 32, 16, 8):
        if rows % cand == 0:
            rt = cand
            break
    return pl.pallas_call(
        _linear_kernel,
        out_shape=jax.ShapeDtypeStruct((rows, out_dim), jnp.float32),
        grid_spec=pltpu.PrefetchScalarGridSpec(
            num_scalar_prefetch=0,
            grid=(rows // rt,),
            in_specs=[pl.BlockSpec((rt, kdim), lambda i: (i, 0)),
                      pl.BlockSpec(w_t_bf16.shape, lambda i: (0, 0),
                                   pipeline_mode=pl.Buffered(1)),
                      pl.BlockSpec(b_row.shape, lambda i: (0, 0),
                                   pipeline_mode=pl.Buffered(1))],
            out_specs=pl.BlockSpec((rt, out_dim), lambda i: (i, 0)),
        ),
        compiler_params=pltpu.CompilerParams(
            dimension_semantics=("parallel",),
            vmem_limit_bytes=vmem_limit),
    )(x2d, w_t_bf16, b_row)


def _pick_block_batch(B, Np):
    """>= 2 grid steps (v7x megacore) while keeping Bt*Np rows big enough to
    feed the projection / MLP GEMMs and the per-step head unroll short."""
    bt = 1
    for cand in (2, 4):
        if B % cand == 0 and B // cand >= 2 and cand * Np <= 512:
            bt = cand
    return bt


def _encoder_layer(x_seq, lp, *, num_heads, seq_len, block_batch, vmem_limit,
                   mlp_chunk=512):
    B, Np, C = x_seq.shape
    head_dim = C // num_heads
    # group heads so each attention-output store spans >=128 lanes (lane-dense)
    hg = max(1, min(num_heads, 128 // max(head_dim, 1)))
    while num_heads % hg:
        hg -= 1
    M = lp['w1_t'].shape[1]
    mlp_chunk = min(mlp_chunk, M)
    Bt = block_batch
    kernel = functools.partial(
        _encoder_kernel, num_heads=num_heads, head_dim=head_dim,
        head_group=hg, seq_len=seq_len, eps=LN_EPS, mlp_chunk=mlp_chunk)

    def resident(a):
        # constant index_map (weights never change across grid steps) and
        # single-buffered so they are not duplicated in VMEM.
        return pl.BlockSpec(a.shape, lambda b, _nd=a.ndim: (0,) * _nd,
                            pipeline_mode=pl.Buffered(1))

    return pl.pallas_call(
        kernel,
        out_shape=jax.ShapeDtypeStruct((B, Np, C), jnp.bfloat16),
        grid_spec=pltpu.PrefetchScalarGridSpec(
            num_scalar_prefetch=0,
            grid=(B // Bt,),
            in_specs=[pl.BlockSpec((Bt, Np, C), lambda b: (b, 0, 0)),
                      resident(lp['ln1_g']), resident(lp['ln1_b']),
                      resident(lp['wqkv_t']), resident(lp['wp_t']),
                      resident(lp['bp']),
                      resident(lp['ln2_g']), resident(lp['ln2_b']),
                      resident(lp['w1_t']), resident(lp['b1']),
                      resident(lp['w2_t']), resident(lp['b2'])],
            out_specs=pl.BlockSpec((Bt, Np, C), lambda b: (b, 0, 0)),
            scratch_shapes=[pltpu.VMEM((Bt * Np, C), jnp.bfloat16)],
        ),
        compiler_params=pltpu.CompilerParams(
            dimension_semantics=("parallel",),
            vmem_limit_bytes=vmem_limit),
    )(x_seq, lp['ln1_g'], lp['ln1_b'], lp['wqkv_t'], lp['wp_t'], lp['bp'],
      lp['ln2_g'], lp['ln2_b'], lp['w1_t'], lp['b1'], lp['w2_t'], lp['b2'])


def _extract_patches(x, patch_size):
    """(B, Cin, H, W) -> (B, P, Cin*ps*ps) matching Conv2d(k=s=ps) ordering."""
    B, Cin, H, W = x.shape
    ph, pw = H // patch_size, W // patch_size
    x = x.reshape(B, Cin, ph, patch_size, pw, patch_size)
    x = x.transpose(0, 2, 4, 1, 3, 5)
    return x.reshape(B, ph * pw, Cin * patch_size * patch_size)


def vit_forward(x_img, kp, cfg):
    """Full ViT forward using Pallas kernels. kp = preprocessed kernel params."""
    B = x_img.shape[0]
    C = cfg['embed_dim']
    ps = cfg['patch_size']
    P = (cfg['img_size'] // ps) ** 2
    N = P + 1
    Np = ((N + 7) // 8) * 8          # pad sequence to a sublane multiple
    vlim = _vmem_limit_bytes()

    # patch embedding: conv(k=s=ps) == patchify (glue) + row-tiled Pallas matmul
    patches = _extract_patches(x_img, ps)                        # (B, P, pd)
    pe = _linear(patches.reshape(B * P, -1), kp['w_patch_t'], kp['b_patch'],
                 vmem_limit=vlim)
    pe = pe.reshape(B, P, C)

    cls = jnp.broadcast_to(kp['cls_token'], (B, 1, C))
    x = jnp.concatenate([cls, pe], axis=1) + kp['pos_embed']     # (B, N, C) f32
    x = jnp.pad(x, ((0, 0), (0, Np - N), (0, 0)))                # (B, Np, C)
    # inter-layer activations travel through HBM in bf16; residual math is f32
    # inside the fused encoder kernel.
    x = x.astype(jnp.bfloat16)

    Bt = _pick_block_batch(B, Np)
    for lp in kp['layers']:
        x = _encoder_layer(x, lp, num_heads=cfg['num_heads'], seq_len=N,
                           block_batch=Bt, vmem_limit=vlim)

    cls_tok = x[:, 0, :]                                          # (B, C) bf16
    nc = cfg['num_classes']
    logits = pl.pallas_call(
        functools.partial(_ln_head_kernel, eps=LN_EPS),
        out_shape=jax.ShapeDtypeStruct((B, nc), jnp.float32),
        grid_spec=pltpu.PrefetchScalarGridSpec(
            num_scalar_prefetch=0,
            grid=(1,),
            in_specs=[pl.BlockSpec((B, C), lambda i: (0, 0)),
                      pl.BlockSpec((1, C), lambda i: (0, 0)),
                      pl.BlockSpec((1, C), lambda i: (0, 0)),
                      pl.BlockSpec((C, nc), lambda i: (0, 0)),
                      pl.BlockSpec((1, nc), lambda i: (0, 0))],
            out_specs=pl.BlockSpec((B, nc), lambda i: (0, 0)),
        ),
        compiler_params=pltpu.CompilerParams(vmem_limit_bytes=vlim),
    )(cls_tok, kp['lnf_g'], kp['lnf_b'], kp['w_head_t'], kp['b_head'])
    return logits


# ---------------------------------------------------------------------------
# Parameters (torch layout) and hoisted preprocessing into kernel layout
# ---------------------------------------------------------------------------

def init_params(key, cfg):
    C, M, ps = cfg['embed_dim'], cfg['mlp_dim'], cfg['patch_size']
    Cin, nc, depth = cfg['in_channels'], cfg['num_classes'], cfg['depth']
    P = (cfg['img_size'] // ps) ** 2
    ks = jax.random.split(key, 6 + depth)
    s = 0.05
    params = {
        'conv_w': jax.random.normal(ks[0], (C, Cin, ps, ps), jnp.float32) * s,
        'conv_b': jax.random.normal(ks[1], (C,), jnp.float32) * s,
        'cls_token': jax.random.normal(ks[2], (1, 1, C), jnp.float32),
        'pos_embed': jax.random.normal(ks[3], (1, P + 1, C), jnp.float32),
        'head_w': jax.random.normal(ks[4], (nc, C), jnp.float32) * s,
        'head_b': jax.random.normal(ks[5], (nc,), jnp.float32) * s,
        'lnf_g': jnp.ones((C,), jnp.float32),
        'lnf_b': jnp.zeros((C,), jnp.float32),
        'layers': [],
    }
    for d in range(depth):
        lk = jax.random.split(ks[6 + d], 7)
        params['layers'].append({
            'ln1_g': jnp.ones((C,), jnp.float32),
            'ln1_b': jnp.zeros((C,), jnp.float32),
            'w_qkv': jax.random.normal(lk[0], (3 * C, C), jnp.float32) * s,
            'w_proj': jax.random.normal(lk[1], (C, C), jnp.float32) * s,
            'b_proj': jax.random.normal(lk[2], (C,), jnp.float32) * s,
            'ln2_g': jnp.ones((C,), jnp.float32),
            'ln2_b': jnp.zeros((C,), jnp.float32),
            'w1': jax.random.normal(lk[3], (M, C), jnp.float32) * s,
            'b1': jax.random.normal(lk[4], (M,), jnp.float32) * s,
            'w2': jax.random.normal(lk[5], (C, M), jnp.float32) * s,
            'b2': jax.random.normal(lk[6], (C,), jnp.float32) * s,
        })
    return params


def preprocess_params(p, cfg):
    """Done ONCE (hoisted out of the per-call path): transpose, fuse QKV, fold
    the attention scale into the Q weights, bf16-cast matmul weights; keep
    biases / LN params as f32 rows."""
    C = cfg['embed_dim']
    head_dim = C // cfg['num_heads']
    scale = head_dim ** (-0.5)

    def row(v):
        return v.reshape(1, -1).astype(jnp.float32)

    kp = {
        'w_patch_t': p['conv_w'].reshape(C, -1).T.astype(jnp.bfloat16),
        'b_patch': row(p['conv_b']),
        'cls_token': p['cls_token'],
        'pos_embed': p['pos_embed'],
        'w_head_t': p['head_w'].T.astype(jnp.bfloat16),
        'b_head': row(p['head_b']),
        'lnf_g': row(p['lnf_g']),
        'lnf_b': row(p['lnf_b']),
        'layers': [],
    }
    for lp in p['layers']:
        wqkv_t = lp['w_qkv'].T.astype(jnp.float32)                # (C, 3C)
        wqkv_t = jnp.concatenate([wqkv_t[:, :C] * scale, wqkv_t[:, C:]], axis=1)
        kp['layers'].append({
            'ln1_g': row(lp['ln1_g']), 'ln1_b': row(lp['ln1_b']),
            'wqkv_t': wqkv_t.astype(jnp.bfloat16),                # fused (C, 3C)
            'wp_t': lp['w_proj'].T.astype(jnp.bfloat16),
            'bp': row(lp['b_proj']),
            'ln2_g': row(lp['ln2_g']), 'ln2_b': row(lp['ln2_b']),
            'w1_t': lp['w1'].T.astype(jnp.bfloat16), 'b1': row(lp['b1']),
            'w2_t': lp['w2'].T.astype(jnp.bfloat16), 'b2': row(lp['b2']),
        })
    return kp


# ---------------------------------------------------------------------------
# Pure-JAX reference mirroring the PyTorch forward (f32 throughout)
# ---------------------------------------------------------------------------

def _layer_norm_ref(x, g, b):
    mu = jnp.mean(x, axis=-1, keepdims=True)
    xc = x - mu
    var = jnp.mean(xc * xc, axis=-1, keepdims=True)
    return xc * jax.lax.rsqrt(var + LN_EPS) * g + b


def vit_reference(x_img, p, cfg):
    B = x_img.shape[0]
    C, H = cfg['embed_dim'], cfg['num_heads']
    D = C // H
    ps = cfg['patch_size']
    patches = _extract_patches(x_img, ps)
    x = jnp.einsum('bpk,ck->bpc', patches, p['conv_w'].reshape(C, -1)) + p['conv_b']
    cls = jnp.broadcast_to(p['cls_token'], (B, 1, C))
    x = jnp.concatenate([cls, x], axis=1) + p['pos_embed']
    for lp in p['layers']:
        h1 = _layer_norm_ref(x, lp['ln1_g'], lp['ln1_b'])
        N = x.shape[1]
        qkv = jnp.einsum('bnc,oc->bno', h1, lp['w_qkv'])
        qkv = qkv.reshape(B, N, 3, H, D).transpose(2, 0, 3, 1, 4)
        q, k, v = qkv[0], qkv[1], qkv[2]
        attn = jnp.einsum('bhnd,bhmd->bhnm', q, k) * (D ** (-0.5))
        attn = jax.nn.softmax(attn, axis=-1)
        o = jnp.einsum('bhnm,bhmd->bhnd', attn, v)
        o = o.transpose(0, 2, 1, 3).reshape(B, N, C)
        x = x + jnp.einsum('bnc,oc->bno', o, lp['w_proj']) + lp['b_proj']
        h2 = _layer_norm_ref(x, lp['ln2_g'], lp['ln2_b'])
        m = jnp.einsum('bnc,mc->bnm', h2, lp['w1']) + lp['b1']
        m = _gelu_tanh(m)
        x = x + jnp.einsum('bnm,cm->bnc', m, lp['w2']) + lp['b2']
    cls_tok = _layer_norm_ref(x[:, 0], p['lnf_g'], p['lnf_b'])
    return jnp.einsum('bc,oc->bo', cls_tok, p['head_w']) + p['head_b']


# ---------------------------------------------------------------------------

if __name__ == "__main__":
    cfg = dict(img_size=16, patch_size=8, in_channels=3, embed_dim=32,
               num_heads=4, depth=2, mlp_dim=64, num_classes=8)
    B = 2

    key = jax.random.PRNGKey(0)
    kx, kparams_key = jax.random.split(key)
    x = jax.random.normal(
        kx, (B, cfg['in_channels'], cfg['img_size'], cfg['img_size']),
        dtype=jnp.float32)

    params = init_params(kparams_key, cfg)
    kparams = preprocess_params(params, cfg)   # hoisted weight preprocessing

    out = vit_forward(x, kparams, cfg)
    out = jax.block_until_ready(out)

    ref = vit_reference(x, params, cfg)
    # bf16 MXU inputs / bf16 inter-layer activations (f32 accumulation) +
    # approx reciprocal -> relaxed tolerance
    np.testing.assert_allclose(np.asarray(out), np.asarray(ref),
                               rtol=5e-2, atol=5e-2)

    print("KERNEL_OK")
</pallas_src>

<mosaic_0001>
module attributes {stable_mosaic.version = 11 : i64} {
  func.func @_linear_kernel(%arg0: i32, %arg1: memref<8x192xf32, #tpu.memory_space<vmem>>, %arg2: memref<192x32xbf16, #tpu.memory_space<vmem>>, %arg3: memref<1x32xf32, #tpu.memory_space<vmem>>, %arg4: memref<8x32xf32, #tpu.memory_space<vmem>>) attributes {dimension_semantics = [#tpu.dimension_semantics<parallel>], iteration_bounds = array<i64: 1>, scalar_prefetch = 0 : i64, scratch_operands = 0 : i64, tpu.core_type = #tpu.core_type<tc>, window_params = [{transform_indices = @transform_0, window_bounds = array<i64: 8, 192>}, {pipeline_mode = #tpu.pipeline_mode<synchronous>, transform_indices = @transform_1, window_bounds = array<i64: 192, 32>}, {pipeline_mode = #tpu.pipeline_mode<synchronous>, transform_indices = @transform_2, window_bounds = array<i64: 1, 32>}, {transform_indices = @transform_3, window_bounds = array<i64: 8, 32>}]} {
    %c0 = arith.constant 0 : index
    %c0_0 = arith.constant 0 : index
    %0 = vector.load %arg1[%c0, %c0_0] : memref<8x192xf32, #tpu.memory_space<vmem>>, vector<8x192xf32>
    %1 = arith.truncf %0 : vector<8x192xf32> to vector<8x192xbf16>
    %c0_1 = arith.constant 0 : index
    %c0_2 = arith.constant 0 : index
    %2 = vector.load %arg2[%c0_1, %c0_2] : memref<192x32xbf16, #tpu.memory_space<vmem>>, vector<192x32xbf16>
    %cst = arith.constant dense<0.000000e+00> : vector<8x32xf32>
    %3 = tpu.matmul %1, %2, %cst {dimension_numbers = #tpu.dot_dimension_numbers<[1], [0], [0], [1], [0, 0, 1, 1], [], []>} : vector<8x192xbf16>, vector<192x32xbf16>, vector<8x32xf32> -> vector<8x32xf32>
    %c0_3 = arith.constant 0 : index
    %c0_4 = arith.constant 0 : index
    %4 = vector.load %arg3[%c0_3, %c0_4] : memref<1x32xf32, #tpu.memory_space<vmem>>, vector<1x32xf32>
    %5 = vector.broadcast %4 : vector<1x32xf32> to vector<8x32xf32>
    %6 = arith.addf %3, %5 : vector<8x32xf32>
    %c0_5 = arith.constant 0 : index
    %c0_6 = arith.constant 0 : index
    %7 = vector.load %arg4[%c0_5, %c0_6] : memref<8x32xf32, #tpu.memory_space<vmem>>, vector<8x32xf32>
    tpu.vector_store %arg4[%c0_5, %c0_6], %6 {strides = array<i32>} : memref<8x32xf32, #tpu.memory_space<vmem>>, vector<8x32xf32>,
    return
  }
  func.func @transform_0(%arg0: i32) -> (i32, i32) {
    %c0_i32 = arith.constant 0 : i32
    %c0_i32_0 = arith.constant 0 : i32
    return %arg0, %c0_i32 : i32, i32
  }
  func.func @transform_1(%arg0: i32) -> (i32, i32) {
    %c0_i32 = arith.constant 0 : i32
    %c0_i32_0 = arith.constant 0 : i32
    %c0_i32_1 = arith.constant 0 : i32
    return %c0_i32, %c0_i32_0 : i32, i32
  }
  func.func @transform_2(%arg0: i32) -> (i32, i32) {
    %c0_i32 = arith.constant 0 : i32
    %c0_i32_0 = arith.constant 0 : i32
    %c0_i32_1 = arith.constant 0 : i32
    return %c0_i32, %c0_i32_0 : i32, i32
  }
  func.func @transform_3(%arg0: i32) -> (i32, i32) {
    %c0_i32 = arith.constant 0 : i32
    %c0_i32_0 = arith.constant 0 : i32
    return %arg0, %c0_i32 : i32, i32
  }
}

</mosaic_0001>

<bundles_post_ra>
// kernel: tpu_custom_call.1
= control target key start
LH: loop header
LB: loop body
LE: loop exit
PB: predicated region body
PF: predicated region fallthrough
CT: control target
= control target key end

     0   :  { %v233_v1 = vmov 0   ;;  %vm123_vm0 = vcmask 523264   ;;  %s303_s0 = inlined_call_operand.vmem [shape: f32[8,192], index: 0, kind: input, shape index: {}]   ;;  %s304_s1 = inlined_call_operand.vmem [shape: bf16[192,32], index: 1, kind: input, shape index: {}]   ;;  %s305_s2 = inlined_call_operand.vmem [shape: f32[1,32], index: 2, kind: input, shape index: {}]   ;;  %s306_s3 = inlined_call_operand.hbm [shape: f32[8,32], index: 3, kind: output, shape index: {}]  }
   0x1   :  { %v199_v0 = vld [vmem:[%s304_s1 + $0x38] sm:$0xff]   ;;  %127 = vmatprep.subr.bf16.mxu0 %v233_v1  ;;  %v200_v2 = vld [vmem:[%s304_s1 + $0x30] sm:$0xff]   ;;  %v201_v3 = vld [vmem:[%s304_s1 + $0x28] sm:$0xff]  }
   0x2   :  { %128 = vmatpush1.bf16.msra.mxu0 %v199_v0  ;;  %v202_v4 = vld [vmem:[%s304_s1 + $0x20] sm:$0xff]   ;;  %v17_v5 = vld [vmem:[%s303_s0 + $0x8] sm:$0xff] }
   0x3   :  { %129 = vmatprep.subr.bf16.mxu0 %v233_v1  ;;  %v19_v6 = vpack.c.bf16 %v17_v5, %v17_v5 }
   0x6   :  { %130 = vmatpush1.bf16.msra.mxu0 %v200_v2 }
   0x7   :  { %131 = vmatprep.subr.bf16.mxu0 %v233_v1 }
   0xa   :  { %132 = vmatpush1.bf16.msra.mxu0 %v201_v3 }
   0xb   :  { %133 = vmatprep.subr.bf16.mxu0 %v233_v1 }
   0xc   :  { %8 = vsyncpa [#allocation3], 0  ;;  %v203_v7 = vld [vmem:[%s304_s1 + $0x18] sm:$0xff]   ;;  %196 = vmatprep.mubr.msk.bf16.mxu0 %vm123_vm0, %v19_v6  ;;  %v204_v8 = vld [vmem:[%s304_s1 + $0x10] sm:$0xff]   ;;  %s234_s15 = smov [#allocation2]   ;;  %vm167_vm1 = vcmask 261120  }
   0xd   :  { %v205_v9 = vld [vmem:[%s304_s1 + $0x8] sm:$0xff]   ;;  %v206_v10 = vld [vmem:[%s304_s1] sm:$0xff]   ;;  %v207_v11 = vld [vmem:[%s304_s1 + $0x58] sm:$0xff]   ;;  %s175_s16 = sshll.u32 %s234_s15, 4  ;;  %s176_s16 = int_to_ptr.vmem [resolvable:$true] %s175_s16 }
   0xe   :  { %134 = vmatpush1.bf16.msra.mxu0 %v202_v4  ;;  %v208_v12 = vld [vmem:[%s304_s1 + $0x50] sm:$0xff]   ;;  %v209_v13 = vld [vmem:[%s304_s1 + $0x48] sm:$0xff]   ;;  %v210_v14 = vld [vmem:[%s304_s1 + $0x40] sm:$0xff]   ;;  %s211_s1 = scalar_lea.vmem %s176_s16, 128  ;;  %p216_p1 = scmp.lt.s32.totalorder %s176_s16, %s176_s16 }
   0xf   :  { %135 = vmatprep.subr.bf16.mxu0 %v233_v1  ;;  %v16_v15 = vld [vmem:[%s303_s0] sm:$0xff]  ;;  %p212_p0 = scmp.ne.s32.totalorder %s176_s16, %s211_s1  ;;  %p217_p2 = scmp.lt.s32.totalorder %s211_s1, %s211_s1 }
  0x10   :  { %v18_v16 = vpack.c.bf16 %v16_v15, %v16_v15  ;;  %v183_v17 = vld [vmem:[%s305_s2] ss:$0 sm:$0xff] }
  0x11   :  { %p218_p3 = por %p217_p2, %p216_p1 }
  0x12   :  { %136 = vmatpush1.bf16.msra.mxu0 %v203_v7 }
  0x13   :  { %137 = vmatprep.subr.bf16.mxu0 %v233_v1  ;;  %p219_p4 = pnand %p218_p3, %p212_p0 }
  0x16   :  { %138 = vmatpush1.bf16.msra.mxu0 %v204_v8 }
  0x17   :  { %139 = vmatprep.subr.bf16.mxu0 %v233_v1 }
  0x1a   :  { %140 = vmatpush1.bf16.msra.mxu0 %v205_v9 }
  0x1b   :  { %141 = vmatprep.subr.bf16.mxu0 %v233_v1 }
  0x1e   :  { %142 = vmatpush1.bf16.msra.mxu0 %v206_v10 }
  0x1f   :  { %151 = vmatprep.subr.bf16.mxu0 %v233_v1 }
  0x22   :  { %152 = vmatpush2.bf16.msra.mxu0 %v207_v11 }
  0x23   :  { %153 = vmatprep.subr.bf16.mxu0 %v233_v1 }
  0x26   :  { %154 = vmatpush2.bf16.msra.mxu0 %v208_v12 }
  0x27   :  { %155 = vmatprep.subr.bf16.mxu0 %v233_v1 }
  0x2a   :  { %156 = vmatpush2.bf16.msra.mxu0 %v209_v13 }
  0x2b   :  { %157 = vmatprep.subr.bf16.mxu0 %v233_v1 }
  0x2e   :  { %158 = vmatpush2.bf16.msra.mxu0 %v210_v14 }
  0x31   :  { %160 = vmatmul.mubr.bf16.vlgmr.msra.gmra.mxu0 %v18_v16 }
  0xf1   :  { %v161_v18 = vpop.f32.mrf.mxu0 }
  0xf2   :  { %v162_v19 = vadd.f32 %v183_v17, %v161_v18 }
  0xf3   :  { %v163_v20 = vpop.f32.mrf.mxu0 }
  0xf4   :  { %168 = vst.msk [vmem:[#allocation2] sm:$0xff] %vm167_vm1, %v162_v19 }
  0xf5   :  { %v164_v21 = vpop.f32.mrf.mxu0 }
  0xf6   :  { %222 = shalt.err (!%p219_p4)
}
  0xf7   :  { %178 = dma.vmem_to_hbm [thread:$0]  %s176_s16, 128, %s306_s3, [#allocation3]   ;;  %v165_v22 = vpop.f32.mrf.mxu0 }
  0xf8   :  { %231 = dma.done.wait [#allocation3], 128  }
  0xf9   :  { %232 = vsyncadd [#allocation3], 4294967168 }
  0xfa   :  { %182 = vsyncpa [#allocation3], 1 }

</bundles_post_ra>
